<compile_context>
chip_gen: v5e
topology: v5e:2x2
jax: 0.10.0
libtpu: 0.0.40
codegen_flags: <defaults>
</compile_context>

<pallas_src>
import math
import jax
import jax.numpy as jnp
from jax.experimental import pallas as pl
from jax.experimental.pallas import tpu as pltpu


def _gen_params():
    """Per-TPU-generation VMEM budget / tiling knobs (safe fallback off-TPU)."""
    try:
        kind = jax.devices()[0].device_kind.lower()
    except Exception:
        kind = ""
    if "v5" in kind:   # v5e: 128 MiB VMEM, 128-wide MXU, 1 TC
        return dict(vmem_limit=100 * 1024 * 1024, max_tile=256,
                    min_steps=1, prefer_128=True)
    if "v6" in kind:   # v6e: 128 MiB VMEM, 1 TC
        return dict(vmem_limit=100 * 1024 * 1024, max_tile=256,
                    min_steps=1, prefer_128=False)
    if "7" in kind:    # v7x: 64 MiB VMEM per TC, 2 TCs -> want >=2 grid steps
        return dict(vmem_limit=40 * 1024 * 1024, max_tile=256,
                    min_steps=2, prefer_128=False)
    # unknown backend / interpret mode
    return dict(vmem_limit=48 * 1024 * 1024, max_tile=256,
                min_steps=1, prefer_128=False)


def _pick_o_tile(O, *, max_tile=256, min_steps=1, prefer_128=False):
    """Largest 32-aligned divisor tile of O under the cap.

    min_steps > 1 (v7x) additionally caps the tile so the parallel grid has at
    least that many steps (one per TensorCore); prefer_128 (v5e) biases toward
    multiples of 128 to match the 128-wide MXU M granularity.
    """
    cap = max_tile
    if min_steps > 1 and O % 32 == 0 and O >= 32 * min_steps:
        cap = min(cap, O // min_steps)
    if O <= cap:
        return O
    steps = (128, 32) if prefer_128 else (32,)
    for step in steps:
        for t in range(cap - cap % step, step - 1, -step):
            if t >= 32 and O % t == 0:
                return t
    return O  # no aligned divisor -> single tile over all channels


def _make_cov1d_block_kernel(*, N, C, K, O_t, Lp, L_out, dilation, stride,
                             eps, use_bn, use_act):
    """Conv1d (one im2col matmul) + train-mode BatchNorm1d + clamp, per O tile."""

    inv_count = 1.0 / float(N * L_out)

    def kernel(x_ref, w_ref, b_ref, gamma_ref, beta_ref, out_ref, r_ref):
        # x_ref  : (C, N*Lp)       padded input (mm_dtype), shared by all O tiles
        # w_ref  : (O_t, K*C)      k-major flattened conv weight tile (mm_dtype)
        # b/gamma/beta : (O_t, 1)  per-channel params, f32, sublane layout
        # out_ref: (O_t, N*L_out)  f32 output tile (channels x batch*length)
        # r_ref  : (K*C, N*L_out)  VMEM scratch: im2col slab for the whole batch

        # ---- build the whole-batch im2col slab (K*N small lane-slice copies) ----
        for k in range(K):                       # K, N static & small -> unrolled
            for n in range(N):
                src = n * Lp + k * dilation
                if stride == 1:
                    sl = x_ref[:, src:src + L_out]
                else:
                    sl = x_ref[:, pl.ds(src, L_out, stride)]   # strided lane load
                r_ref[k * C:(k + 1) * C, n * L_out:(n + 1) * L_out] = sl

        # ---- one MXU matmul for the whole batch / O tile (f32 accumulation) ----
        y = jnp.dot(w_ref[...], r_ref[...],
                    preferred_element_type=jnp.float32)        # (O_t, N*L_out)

        # ---- epilogue: folded per-channel scale/shift (+ clamp) ----
        if use_bn:
            # train-mode batch stats over (N, L): single lane reductions
            s = jnp.sum(y, axis=1, keepdims=True)              # (O_t, 1)
            ss = jnp.sum(y * y, axis=1, keepdims=True)
            mean = s * inv_count
            # one-pass biased variance in f32 (fine at bf16-level tolerance)
            var = jnp.maximum(ss * inv_count - mean * mean, 0.0)
            inv = jax.lax.rsqrt(var + eps)                     # EUP slot
            scale = gamma_ref[...] * inv
            # conv bias cancels exactly with the batch-mean subtraction
            shift = beta_ref[...] - mean * scale
            y = y * scale + shift
        else:
            y = y + b_ref[...]                                 # conv bias only
        if use_act:
            y = jnp.clip(y, 0.0, 20.0)
        out_ref[...] = y.astype(out_ref.dtype)

    return kernel


class Cov1dBlockPallas:
    """JAX/Pallas port of the PyTorch Cov1dBlock forward pass (train mode)."""

    def __init__(self, input_size, output_size, kernal_size, stride,
                 drop_out_prob=-1.0, dilation=1, padding='same', bn=True,
                 activationUse=True, matmul_dtype=jnp.bfloat16,
                 key=jax.random.PRNGKey(0)):
        self.input_size = input_size
        self.output_size = output_size
        self.k = kernal_size[0]
        self.stride = stride
        self.dilation = dilation
        self.use_bn = bn
        self.use_act = activationUse
        self.eps = 0.001            # matches nn.BatchNorm1d(..., eps=0.001)
        self.mm_dtype = matmul_dtype

        # --- padding computation copied verbatim from the PyTorch module ---
        # (it intentionally uses input_size, i.e. the CHANNEL count, as
        #  "input_rows" — reproduced exactly for fidelity)
        input_rows = input_size
        filter_rows = self.k
        out_rows = (input_rows + stride - 1) // stride
        if padding == 'same':
            padding_rows = max(0, (out_rows - 1) * stride
                               + (filter_rows - 1) * dilation + 1 - input_rows)
            addPaddings = padding_rows
        elif padding == 'half':
            addPaddings = self.k
        elif padding == 'invalid':
            addPaddings = 0
        else:
            addPaddings = 0
        self.pad = (addPaddings // 2) if addPaddings > 0 else 0

        # TODO(synk): training-mode nn.Dropout is stochastic; only the default
        # drop_out_prob == -1 (no dropout) path is implemented.
        assert drop_out_prob == -1.0, "dropout path not implemented"

        # --- deterministic parameter init (PyTorch-style uniform bounds) ---
        kw, kb, kg, kbe = jax.random.split(key, 4)
        fan_in = input_size * self.k
        bound = 1.0 / math.sqrt(fan_in)
        O, C, K = output_size, input_size, self.k
        self.w = jax.random.uniform(kw, (O, C, K), jnp.float32, -bound, bound)
        # k-major pre-flattened weights matching the im2col row order:
        #   w2[o, k*C + c] == w[o, c, k]      (reshape/cast done once, never in-kernel)
        self.w2 = self.w.transpose(0, 2, 1).reshape(O, K * C).astype(matmul_dtype)
        # per-channel params as (O, 1): sublane layout, lane-broadcast in the kernel
        self.b = jax.random.uniform(kb, (O, 1), jnp.float32, -bound, bound)
        self.gamma = jax.random.uniform(kg, (O, 1), jnp.float32, 0.5, 1.5)
        self.beta = jax.random.uniform(kbe, (O, 1), jnp.float32, -0.1, 0.1)

    def __call__(self, x):
        # reflection padding (matches nn.ReflectionPad1d(pad))
        if self.pad > 0:
            x = jnp.pad(x, ((0, 0), (0, 0), (self.pad, self.pad)), mode='reflect')
        N, C, Lp = x.shape
        K = self.k
        eff = (K - 1) * self.dilation + 1
        L_out = (Lp - eff) // self.stride + 1
        O = self.output_size

        gen = _gen_params()
        O_t = _pick_o_tile(O, max_tile=gen["max_tile"], min_steps=gen["min_steps"],
                           prefer_128=gen["prefer_128"])
        grid = (O // O_t,)

        # (C, N*Lp) bf16 layout: channels on sublanes, batch-concatenated length
        # on lanes -> every conv tap is a contiguous (or strided) lane slice.
        x2 = x.transpose(1, 0, 2).reshape(C, N * Lp).astype(self.mm_dtype)

        # rough VMEM budget guard for the resident tiles
        itemsize = jnp.dtype(self.mm_dtype).itemsize
        est = (C * N * Lp * itemsize                 # resident padded input
               + 2 * O_t * N * L_out * 4             # double-buffered f32 output tile
               + 2 * O_t * K * C * itemsize          # double-buffered weight tile
               + K * C * N * L_out * itemsize)       # im2col scratch
        if est > gen["vmem_limit"]:
            # TODO(synk): add an L-tiled two-pass (conv+stats, then normalize)
            # fallback for batches whose padded input does not fit VMEM.
            raise ValueError(f"Cov1dBlock tiles exceed VMEM budget: {est} bytes")

        kernel = _make_cov1d_block_kernel(
            N=N, C=C, K=K, O_t=O_t, Lp=Lp, L_out=L_out,
            dilation=self.dilation, stride=self.stride,
            eps=self.eps, use_bn=self.use_bn, use_act=self.use_act)

        y2 = pl.pallas_call(
            kernel,
            out_shape=jax.ShapeDtypeStruct((O, N * L_out), jnp.float32),
            grid=grid,
            in_specs=[
                pl.BlockSpec((C, N * Lp), lambda o: (0, 0)),   # shared padded input
                pl.BlockSpec((O_t, K * C), lambda o: (o, 0)),  # flat weights (k-major)
                pl.BlockSpec((O_t, 1), lambda o: (o, 0)),      # conv bias
                pl.BlockSpec((O_t, 1), lambda o: (o, 0)),      # bn gamma
                pl.BlockSpec((O_t, 1), lambda o: (o, 0)),      # bn beta
            ],
            out_specs=pl.BlockSpec((O_t, N * L_out), lambda o: (o, 0)),
            scratch_shapes=[pltpu.VMEM((K * C, N * L_out), self.mm_dtype)],
            compiler_params=pltpu.CompilerParams(
                # O-channel tiles are fully independent (BN stats are per-channel),
                # so shard the grid across TensorCores on v7x; no-op on v5e/v6e.
                dimension_semantics=("parallel",),
                vmem_limit_bytes=gen["vmem_limit"],
            ),
        )(x2, self.w2, self.b, self.gamma, self.beta)

        # (O, N*L_out) -> (N, O, L_out): cheap XLA relayout outside the kernel
        return y2.reshape(O, N, L_out).transpose(1, 0, 2)

    # pure-JAX f32 reference for correctness checking
    def reference(self, x):
        if self.pad > 0:
            x = jnp.pad(x, ((0, 0), (0, 0), (self.pad, self.pad)), mode='reflect')
        y = jax.lax.conv_general_dilated(
            x, self.w, window_strides=(self.stride,), padding='VALID',
            rhs_dilation=(self.dilation,),
            dimension_numbers=('NCH', 'OIH', 'NCH'))
        y = y + self.b.reshape(1, -1, 1)
        if self.use_bn:
            mean = jnp.mean(y, axis=(0, 2), keepdims=True)
            var = jnp.mean((y - mean) ** 2, axis=(0, 2), keepdims=True)
            y = (y - mean) / jnp.sqrt(var + self.eps)
            y = y * self.gamma.reshape(1, -1, 1) + self.beta.reshape(1, -1, 1)
        if self.use_act:
            y = jnp.clip(y, 0.0, 20.0)
        return y


if __name__ == "__main__":
    key = jax.random.PRNGKey(0)
    k_in, k_par = jax.random.split(key)

    # small shapes: batch=2, in_channels=4, out_channels=8, length=16, kernel=3
    N, C_in, C_out, L = 2, 4, 8, 16
    x = jax.random.normal(k_in, (N, C_in, L), jnp.float32)

    # conv + batchnorm + clamp
    block = Cov1dBlockPallas(input_size=C_in, output_size=C_out,
                             kernal_size=(3,), stride=1, dilation=1,
                             padding='same', bn=True, activationUse=True,
                             key=k_par)
    out = jax.block_until_ready(block(x))
    ref = block.reference(x)
    assert out.shape == ref.shape == (N, C_out, L), (out.shape, ref.shape)
    # bf16 MXU operands with f32 accumulation -> compare at bf16-level tolerance
    err = float(jnp.max(jnp.abs(out - ref)))
    assert jnp.allclose(out, ref, rtol=2e-2, atol=2e-2), \
        f"bn path mismatch, max abs err={err}"

    # conv + bias + clamp (no BN) path
    block2 = Cov1dBlockPallas(input_size=C_in, output_size=C_out,
                              kernal_size=(3,), stride=1, dilation=1,
                              padding='same', bn=False, activationUse=True,
                              key=k_par)
    out2 = jax.block_until_ready(block2(x))
    ref2 = block2.reference(x)
    err2 = float(jnp.max(jnp.abs(out2 - ref2)))
    assert jnp.allclose(out2, ref2, rtol=2e-2, atol=2e-2), \
        f"no-bn path mismatch, max abs err={err2}"

    print("KERNEL_OK")
</pallas_src>

<mosaic_0001>
module attributes {stable_mosaic.version = 11 : i64} {
  func.func @kernel(%arg0: i32, %arg1: memref<4x36xbf16, #tpu.memory_space<vmem>>, %arg2: memref<8x12xbf16, #tpu.memory_space<vmem>>, %arg3: memref<8x1xf32, #tpu.memory_space<vmem>>, %arg4: memref<8x1xf32, #tpu.memory_space<vmem>>, %arg5: memref<8x1xf32, #tpu.memory_space<vmem>>, %arg6: memref<8x32xf32, #tpu.memory_space<vmem>>, %arg7: memref<12x32xbf16, #tpu.memory_space<vmem>>) attributes {dimension_semantics = [#tpu.dimension_semantics<parallel>], iteration_bounds = array<i64: 1>, scalar_prefetch = 0 : i64, scratch_operands = 1 : i64, tpu.core_type = #tpu.core_type<tc>, window_params = [{pipeline_mode = #tpu.pipeline_mode<synchronous>, transform_indices = @transform_0, window_bounds = array<i64: 4, 36>}, {transform_indices = @transform_1, window_bounds = array<i64: 8, 12>}, {transform_indices = @transform_2, window_bounds = array<i64: 8, 1>}, {transform_indices = @transform_3, window_bounds = array<i64: 8, 1>}, {transform_indices = @transform_4, window_bounds = array<i64: 8, 1>}, {transform_indices = @transform_5, window_bounds = array<i64: 8, 32>}]} {
    %c0 = arith.constant 0 : index
    %c0_0 = arith.constant 0 : index
    %0 = vector.load %arg1[%c0, %c0_0] : memref<4x36xbf16, #tpu.memory_space<vmem>>, vector<4x16xbf16>
    %c0_1 = arith.constant 0 : index
    %c0_2 = arith.constant 0 : index
    %1 = vector.load %arg7[%c0_1, %c0_2] : memref<12x32xbf16, #tpu.memory_space<vmem>>, vector<4x16xbf16>
    tpu.vector_store %arg7[%c0_1, %c0_2], %0 {strides = array<i32>} : memref<12x32xbf16, #tpu.memory_space<vmem>>, vector<4x16xbf16>,
    %c0_3 = arith.constant 0 : index
    %c18 = arith.constant 18 : index
    %2 = vector.load %arg1[%c0_3, %c18] : memref<4x36xbf16, #tpu.memory_space<vmem>>, vector<4x16xbf16>
    %c0_4 = arith.constant 0 : index
    %c16 = arith.constant 16 : index
    %3 = vector.load %arg7[%c0_4, %c16] : memref<12x32xbf16, #tpu.memory_space<vmem>>, vector<4x16xbf16>
    tpu.vector_store %arg7[%c0_4, %c16], %2 {strides = array<i32>} : memref<12x32xbf16, #tpu.memory_space<vmem>>, vector<4x16xbf16>,
    %c0_5 = arith.constant 0 : index
    %c1 = arith.constant 1 : index
    %4 = vector.load %arg1[%c0_5, %c1] : memref<4x36xbf16, #tpu.memory_space<vmem>>, vector<4x16xbf16>
    %c4 = arith.constant 4 : index
    %c0_6 = arith.constant 0 : index
    %5 = vector.load %arg7[%c4, %c0_6] : memref<12x32xbf16, #tpu.memory_space<vmem>>, vector<4x16xbf16>
    tpu.vector_store %arg7[%c4, %c0_6], %4 {strides = array<i32>} : memref<12x32xbf16, #tpu.memory_space<vmem>>, vector<4x16xbf16>,
    %c0_7 = arith.constant 0 : index
    %c19 = arith.constant 19 : index
    %6 = vector.load %arg1[%c0_7, %c19] : memref<4x36xbf16, #tpu.memory_space<vmem>>, vector<4x16xbf16>
    %c4_8 = arith.constant 4 : index
    %c16_9 = arith.constant 16 : index
    %7 = vector.load %arg7[%c4_8, %c16_9] : memref<12x32xbf16, #tpu.memory_space<vmem>>, vector<4x16xbf16>
    tpu.vector_store %arg7[%c4_8, %c16_9], %6 {strides = array<i32>} : memref<12x32xbf16, #tpu.memory_space<vmem>>, vector<4x16xbf16>,
    %c0_10 = arith.constant 0 : index
    %c2 = arith.constant 2 : index
    %8 = vector.load %arg1[%c0_10, %c2] : memref<4x36xbf16, #tpu.memory_space<vmem>>, vector<4x16xbf16>
    %c8 = arith.constant 8 : index
    %c0_11 = arith.constant 0 : index
    %9 = vector.load %arg7[%c8, %c0_11] : memref<12x32xbf16, #tpu.memory_space<vmem>>, vector<4x16xbf16>
    tpu.vector_store %arg7[%c8, %c0_11], %8 {strides = array<i32>} : memref<12x32xbf16, #tpu.memory_space<vmem>>, vector<4x16xbf16>,
    %c0_12 = arith.constant 0 : index
    %c20 = arith.constant 20 : index
    %10 = vector.load %arg1[%c0_12, %c20] : memref<4x36xbf16, #tpu.memory_space<vmem>>, vector<4x16xbf16>
    %c8_13 = arith.constant 8 : index
    %c16_14 = arith.constant 16 : index
    %11 = vector.load %arg7[%c8_13, %c16_14] : memref<12x32xbf16, #tpu.memory_space<vmem>>, vector<4x16xbf16>
    tpu.vector_store %arg7[%c8_13, %c16_14], %10 {strides = array<i32>} : memref<12x32xbf16, #tpu.memory_space<vmem>>, vector<4x16xbf16>,
    %c0_15 = arith.constant 0 : index
    %c0_16 = arith.constant 0 : index
    %12 = vector.load %arg2[%c0_15, %c0_16] : memref<8x12xbf16, #tpu.memory_space<vmem>>, vector<8x12xbf16>
    %c0_17 = arith.constant 0 : index
    %c0_18 = arith.constant 0 : index
    %13 = vector.load %arg7[%c0_17, %c0_18] : memref<12x32xbf16, #tpu.memory_space<vmem>>, vector<12x32xbf16>
    %cst = arith.constant dense<0.000000e+00> : vector<8x32xf32>
    %14 = tpu.matmul %12, %13, %cst {dimension_numbers = #tpu.dot_dimension_numbers<[1], [0], [0], [1], [0, 0, 1, 1], [], []>} : vector<8x12xbf16>, vector<12x32xbf16>, vector<8x32xf32> -> vector<8x32xf32>
    %cst_19 = arith.constant dense<0.000000e+00> : vector<8xf32>
    %15 = vector.multi_reduction <add>, %14, %cst_19 [1] : vector<8x32xf32> to vector<8xf32>
    %16 = vector.shape_cast %15 : vector<8xf32> to vector<8x1xf32>
    %17 = arith.mulf %14, %14 : vector<8x32xf32>
    %cst_20 = arith.constant dense<0.000000e+00> : vector<8xf32>
    %18 = vector.multi_reduction <add>, %17, %cst_20 [1] : vector<8x32xf32> to vector<8xf32>
    %19 = vector.shape_cast %18 : vector<8xf32> to vector<8x1xf32>
    %cst_21 = arith.constant 3.125000e-02 : f32
    %20 = vector.broadcast %cst_21 : f32 to vector<8x1xf32>
    %21 = arith.mulf %16, %20 : vector<8x1xf32>
    %cst_22 = arith.constant 3.125000e-02 : f32
    %22 = vector.broadcast %cst_22 : f32 to vector<8x1xf32>
    %23 = arith.mulf %19, %22 : vector<8x1xf32>
    %24 = arith.mulf %21, %21 : vector<8x1xf32>
    %25 = arith.subf %23, %24 : vector<8x1xf32>
    %cst_23 = arith.constant 0.000000e+00 : f32
    %26 = vector.broadcast %cst_23 : f32 to vector<8x1xf32>
    %27 = arith.maximumf %25, %26 : vector<8x1xf32>
    %cst_24 = arith.constant 1.000000e-03 : f32
    %28 = vector.broadcast %cst_24 : f32 to vector<8x1xf32>
    %29 = arith.addf %27, %28 : vector<8x1xf32>
    %30 = math.rsqrt %29 : vector<8x1xf32>
    %c0_25 = arith.constant 0 : index
    %c0_26 = arith.constant 0 : index
    %31 = vector.load %arg4[%c0_25, %c0_26] : memref<8x1xf32, #tpu.memory_space<vmem>>, vector<8x1xf32>
    %32 = arith.mulf %31, %30 : vector<8x1xf32>
    %c0_27 = arith.constant 0 : index
    %c0_28 = arith.constant 0 : index
    %33 = vector.load %arg5[%c0_27, %c0_28] : memref<8x1xf32, #tpu.memory_space<vmem>>, vector<8x1xf32>
    %34 = arith.mulf %21, %32 : vector<8x1xf32>
    %35 = arith.subf %33, %34 : vector<8x1xf32>
    %36 = vector.broadcast %32 : vector<8x1xf32> to vector<8x32xf32>
    %37 = arith.mulf %14, %36 : vector<8x32xf32>
    %38 = vector.broadcast %35 : vector<8x1xf32> to vector<8x32xf32>
    %39 = arith.addf %37, %38 : vector<8x32xf32>
    %cst_29 = arith.constant 0.000000e+00 : f32
    %cst_30 = arith.constant 2.000000e+01 : f32
    %40 = vector.broadcast %cst_29 : f32 to vector<8x32xf32>
    %41 = arith.maximumf %40, %39 : vector<8x32xf32>
    %42 = vector.broadcast %cst_30 : f32 to vector<8x32xf32>
    %43 = arith.minimumf %42, %41 : vector<8x32xf32>
    %c0_31 = arith.constant 0 : index
    %c0_32 = arith.constant 0 : index
    %44 = vector.load %arg6[%c0_31, %c0_32] : memref<8x32xf32, #tpu.memory_space<vmem>>, vector<8x32xf32>
    tpu.vector_store %arg6[%c0_31, %c0_32], %43 {strides = array<i32>} : memref<8x32xf32, #tpu.memory_space<vmem>>, vector<8x32xf32>,
    return
  }
  func.func @transform_0(%arg0: i32) -> (i32, i32) {
    %c0_i32 = arith.constant 0 : i32
    %c0_i32_0 = arith.constant 0 : i32
    %c0_i32_1 = arith.constant 0 : i32
    return %c0_i32, %c0_i32_0 : i32, i32
  }
  func.func @transform_1(%arg0: i32) -> (i32, i32) {
    %c0_i32 = arith.constant 0 : i32
    %c0_i32_0 = arith.constant 0 : i32
    return %arg0, %c0_i32 : i32, i32
  }
  func.func @transform_2(%arg0: i32) -> (i32, i32) {
    %c0_i32 = arith.constant 0 : i32
    %c0_i32_0 = arith.constant 0 : i32
    return %arg0, %c0_i32 : i32, i32
  }
  func.func @transform_3(%arg0: i32) -> (i32, i32) {
    %c0_i32 = arith.constant 0 : i32
    %c0_i32_0 = arith.constant 0 : i32
    return %arg0, %c0_i32 : i32, i32
  }
  func.func @transform_4(%arg0: i32) -> (i32, i32) {
    %c0_i32 = arith.constant 0 : i32
    %c0_i32_0 = arith.constant 0 : i32
    return %arg0, %c0_i32 : i32, i32
  }
  func.func @transform_5(%arg0: i32) -> (i32, i32) {
    %c0_i32 = arith.constant 0 : i32
    %c0_i32_0 = arith.constant 0 : i32
    return %arg0, %c0_i32 : i32, i32
  }
}

</mosaic_0001>

<bundles_post_ra>
// kernel: tpu_custom_call.1
= control target key start
LH: loop header
LB: loop body
LE: loop exit
PB: predicated region body
PF: predicated region fallthrough
CT: control target
= control target key end

     0   :  { %s275_s0 = inlined_call_operand.vmem [shape: bf16[4,36], index: 0, kind: input, shape index: {}]   ;;  %s276_s1 = inlined_call_operand.vmem [shape: bf16[8,12], index: 1, kind: input, shape index: {}]   ;;  %s277_s2 = inlined_call_operand.vmem [shape: f32[8,1], index: 2, kind: input, shape index: {}]   ;;  %s278_s3 = inlined_call_operand.vmem [shape: f32[8,1], index: 3, kind: input, shape index: {}]   ;;  %s279_s4 = inlined_call_operand.vmem [shape: f32[8,1], index: 4, kind: input, shape index: {}]   ;;  %s280_s5 = inlined_call_operand.hbm [shape: f32[8,32], index: 5, kind: output, shape index: {}]  }
   0x1   :  { %v25_v0 = vld [vmem:[%s275_s0] sm:$0x3] }
   0x2   :  { %27 = vst [vmem:[#allocation1] ss:$2 sm:$0xff] %v25_v0 }
   0x3   :  { %10 = vsyncpa [#allocation4], 0  ;;  %v35_v1 = vld [vmem:[%s275_s0] sm:$0x3]  ;;  %s206_s2 = smov 126   ;;  %s207_s24 = smov 127  }
   0x4   :  { %v46_v3 = vld [vmem:[%s275_s0] sm:$0x3]  ;;  %s208_s27 = smov 125   ;;  %s209_s30 = smov 124   ;;  %vm23_vm0 = vcmask 123904   ;;  %vm33_vm1 = vcmask 255104  }
   0x5   :  { %v57_v5 = vld [vmem:[%s275_s0] sm:$0x3]  ;;  %vm44_vm2 = vcmask 125954   ;;  %vm55_vm3 = vcmask 257154   ;;  %vm87_vm4 = vcmask 1045504   ;;  %vm83_vm5 = vcmask 97280  }
   0x6   :  { %v66_v7 = vld [vmem:[%s275_s0] sm:$0x3]  ;;  %vm104_vm6 = vcmask 261120   ;;  %v210_v26 = vmov 0   ;;  %s211_s12 = smov [#allocation3]  }
   0x7   :  { %v22_v10 = vld [vmem:[%s275_s0] sm:$0x3]  ;;  %176 = vset.pattern.permute.xlu1 %v210_v26  ;;  %177 = vset.pattern.permute.xlu0 %v210_v26  ;;  %s153_s13 = sshll.u32 %s211_s12, 4  ;;  %s154_s13 = int_to_ptr.vmem [resolvable:$true] %s153_s13 }
   0x8   :  { %24 = vst.msk [vmem:[#allocation2] sm:$0x3] %vm23_vm0, %v22_v10  ;;  %v75_v20 = vld [vmem:[%s276_s1] sm:$0xf] }
   0x9   :  { %v28_v2 = vld.sshfl [vmem:[#allocation1] sm:$0xff pattern:$0x75643120] }
   0xa   :  { %30 = vrot.lane.b32.xlu1 %v28_v2, %s206_s2  ;;  %38 = vst [vmem:[#allocation1 + $0x1] ss:$2 sm:$0xff] %v35_v1  ;;  %v128_v41 = vld [vmem:[%s278_s3] sm:$0xff]  ;;  %s155_s3 = sshll.u32 %s280_s5, 4  ;;  %s156_s3 = int_to_ptr.hbm [resolvable:$true] %s155_s3 }
   0xb   :  { %v130_v45 = vld [vmem:[%s279_s4] sm:$0xff] }
  0x11   :  { %v39_v4 = vld.sshfl [vmem:[#allocation1] sm:$0xff pattern:$0x75643120] }
  0x12   :  { %41 = vrot.lane.b32.xlu0 %v39_v4, %s207_s24  ;;  %49 = vst [vmem:[#allocation1 + $0x1] ss:$2 sm:$0xff] %v46_v3 }
  0x19   :  { %v50_v6 = vld.sshfl [vmem:[#allocation1] sm:$0xff pattern:$0x75643120] }
  0x1a   :  { %52 = vrot.lane.b32.xlu1 %v50_v6, %s208_s27  ;;  %59 = vst [vmem:[#allocation1] ss:$2 sm:$0xff] %v57_v5 }
  0x21   :  { %v60_v8 = vld.sshfl [vmem:[#allocation1] sm:$0xff pattern:$0x75643120] }
  0x22   :  { %62 = vrot.lane.b32.xlu0 %v60_v8, %s206_s2  ;;  %68 = vst [vmem:[#allocation1] ss:$2 sm:$0xff] %v66_v7 }
  0x29   :  { %v69_v9 = vld.sshfl [vmem:[#allocation1] sm:$0xff pattern:$0x75643120] }
  0x2a   :  { %71 = vrot.lane.b32.xlu2 %v69_v9, %s209_s30 }
  0x7c   :  { %v31_v11 = vpop.permute.xlu1 %30 }
  0x7d   :  { %34 = vst.msk [vmem:[#allocation2] sm:$0x3] %vm33_vm1, %v31_v11 }
  0x84   :  { %v42_v12 = vpop.permute.xlu0 %41  ;;  %v72_v14 = vpop.permute.xlu2 %71 }
  0x85   :  { %45 = vst.msk [vmem:[#allocation2] sm:$0xc] %vm44_vm2, %v42_v12 }
  0x8c   :  { %v53_v13 = vpop.permute.xlu1 %52 }
  0x8d   :  { %56 = vst.msk [vmem:[#allocation2] sm:$0xc] %vm55_vm3, %v53_v13 }
  0x94   :  { %v63_v15 = vpop.permute.xlu0 %62  ;;  %v166_v16 = vld [vmem:[#allocation2] sm:$0xf] }
  0x95   :  { %65 = vst.msk [vmem:[#allocation2 + $0x4] sm:$0x3] %vm23_vm0, %v63_v15 }
  0x96   :  { %74 = vst.msk [vmem:[#allocation2 + $0x4] sm:$0x3] %vm33_vm1, %v72_v14 }
  0x9d   :  { %v169_v17 = vld [vmem:[#allocation2] sm:$0x30] }
  0x9e   :  { %v167_v18 = vor.u32 %v169_v17, %v166_v16 }
  0xa0   :  { %v89_v19 = vsel %vm87_vm4, %v167_v18, 0 }
  0xa1   :  { %98 = vmatpush.bf16.msra.mxu0 %v89_v19 }
  0xa4   :  { %168 = vmatmul.msk.bf16.vlgmr.msra.gmra.mxu0 %vm83_vm5, %v75_v20 }
 0x121   :  { %v100_v21 = vpop.f32.mrf.mxu0 }
 0x122   :  { %v105_v22 = vsel %vm104_vm6, %v100_v21, 0.0  ;;  %v108_v23 = vmul.f32 %v100_v21, %v100_v21 }
 0x123   :  { %106 = vadd.xlane.f32.xlu2 %v105_v22 }
 0x124   :  { %v109_v24 = vsel %vm104_vm6, %v108_v23, 0.0 }
 0x125   :  { %110 = vadd.xlane.f32.xlu0 %v109_v24 }
 0x129   :  { %v102_v25 = vpop.f32.mrf.mxu0 }
 0x196   :  { %v107_v27 = vpop.xlane.xlu2 %106 }
 0x197   :  { %v112_v28 = vmul.f32 0.03125, %v107_v27 }
 0x198   :  { %v111_v29 = vpop.xlane.xlu0 %110 }
 0x199   :  { %v114_v30 = vmul.f32 %v112_v28, %v112_v28  ;;  %v113_v31 = vmul.f32 0.03125, %v111_v29 }
 0x19b   :  { %v115_v32 = vsub.f32 %v113_v31, %v114_v30 }
 0x19d   :  { %v116_v33 = vmax.f32 %v115_v32, 0.0 }
 0x19f   :  { %v117_v34 = vadd.f32 0.001, %v116_v33 }
 0x1a1   :  { %178 = vrsqrt.f32 %v117_v34  ;;  %vm124_vm8 = vweird.f32 %v117_v34 }
 0x1a7   :  { %v179_v35 = vpop.eup %178 }
 0x1a8   :  { %v119_v36 = vmul.f32 %v179_v35, %v117_v34  ;;  %vm125_vm7 = vweird.f32 %v179_v35 }
 0x1a9   :  { %vm126_vm9 = vmor %vm124_vm8, %vm125_vm7 }
 0x1aa   :  { %v120_v37 = vmul.f32 %v179_v35, %v119_v36 }
 0x1ac   :  { %v121_v38 = vmul.f32 0.5, %v120_v37 }
 0x1ae   :  { %v122_v39 = vsub.f32 1.5, %v121_v38 }
 0x1b0   :  { %v123_v40 = vmul.f32 %v179_v35, %v122_v39 }
 0x1b2   :  { %v127_v42 = vsel %vm126_vm9, %v179_v35, %v123_v40 }
 0x1b3   :  { %v129_v43 = vmul.f32 %v128_v41, %v127_v42 }
 0x1b5   :  { %135 = vperm.xlu1 %176, %v129_v43   ;;  %v131_v44 = vmul.f32 %v129_v43, %v112_v28 }
 0x1b7   :  { %v132_v46 = vsub.f32 %v130_v45, %v131_v44 }
 0x1bd   :  { %141 = vperm.xlu1 %176, %v132_v46  }
 0x227   :  { %v136_v47 = vpop.permute.xlu1 %135 }
 0x228   :  { %v138_v48 = vmul.f32 %v136_v47, %v100_v21 }
 0x22f   :  { %v142_v49 = vpop.permute.xlu1 %141 }
 0x230   :  { %v144_v50 = vadd.f32 %v142_v49, %v138_v48 }
 0x232   :  { %v145_v51 = vmax.f32 %v144_v50, 0.0 }
 0x234   :  { %v146_v52 = vmin.f32 %v145_v51, 20.0 }
 0x236   :  { %147 = vst.msk [vmem:[#allocation3] sm:$0xff] %vm104_vm6, %v146_v52 }
 0x237   :  { %158 = dma.vmem_to_hbm [thread:$0]  %s154_s13, 128, %s156_s3, [#allocation4]  }
 0x238   :  { %204 = dma.done.wait [#allocation4], 128  }
 0x239   :  { %205 = vsyncadd [#allocation4], 4294967168 }
 0x23a   :  { %163 = vsyncpa [#allocation4], 1 }

</bundles_post_ra>
